<compile_context>
chip_gen: v6e
topology: v6e:2x2x1
jax: 0.10.0
libtpu: 0.0.40
codegen_flags: <defaults>
</compile_context>

<pallas_src>
import jax
import jax.numpy as jnp
from jax import lax
from jax.experimental import pallas as pl
from jax.experimental.pallas import tpu as pltpu


def _round_up(x, m):
    return ((x + m - 1) // m) * m


def _vmem_capacity_bytes():
    """Per-TensorCore VMEM capacity; conservative fallback (v7x = 64 MiB)."""
    try:
        return int(pltpu.get_tpu_info().vmem_capacity_bytes)
    except Exception:
        return 64 * 1024 * 1024


def _hybrid_embed_kernel(x_ref, w_ref, b_ref, o_ref):
    """One (batch, patch-tile) grid step.

    x_ref: (C, TN)  bf16 channel-major slab of the flattened feature map
    w_ref: (C, D)   bf16 projection weight (VMEM-resident, single-buffered)
    b_ref: (1, D)   f32  projection bias   (VMEM-resident, single-buffered)
    o_ref: (TN, D)  lane-dense output tile, already in final (B, N, D) layout
    """
    # Contracting dim 0 of the slab against dim 0 of the weight IS
    # flatten(2).transpose(1,2) @ W^T, done on the MXU with f32 accumulation.
    # (If Mosaic lowers this via an XLU transpose of the slab, the XLU is
    # otherwise idle here and hides under the MXU.)
    acc = lax.dot_general(
        x_ref[...], w_ref[...],
        dimension_numbers=(((0,), (0,)), ((), ())),
        preferred_element_type=jnp.float32,
    )                                              # (TN, D) f32
    o_ref[...] = (acc + b_ref[...]).astype(o_ref.dtype)


def hybrid_embed(feat, weight, bias, *, tile_n=None, compute_dtype=jnp.bfloat16):
    """feat: (B, C, Hf, Wf); weight: (D, C) [torch Linear layout]; bias: (D,).

    Returns (B, Hf*Wf, D) — HybridEmbed.forward semantics after the backbone.
    """
    B, C, H, W = feat.shape
    N = H * W
    D, Cw = weight.shape
    assert Cw == C, f"weight expects in_features={Cw}, feature map has C={C}"
    out_dtype = feat.dtype

    # ---- TPU-friendly padding: lane-dense D, packed sublanes for C ---------
    D_pad = _round_up(D, 128)          # >= one full lane width / MXU output
    C_pad = _round_up(C, 16)           # bf16 sublane packing

    x = feat.reshape(B, C, N).astype(compute_dtype)           # flatten(2), bf16
    if C_pad != C:
        x = jnp.pad(x, ((0, 0), (0, C_pad - C), (0, 0)))
    w = jnp.transpose(weight).astype(compute_dtype)            # (C, D) bf16
    w = jnp.pad(w, ((0, C_pad - C), (0, D_pad - D)))
    b = jnp.pad(bias.astype(jnp.float32), (0, D_pad - D)).reshape(1, D_pad)

    # ---- VMEM-budget-aware tile selection ----------------------------------
    x_bytes = jnp.dtype(compute_dtype).itemsize
    o_bytes = jnp.dtype(out_dtype).itemsize
    resident = C_pad * D_pad * x_bytes + D_pad * 4             # weight + bias (1 buffer)
    cap = _vmem_capacity_bytes()
    budget = int(cap * 0.6)                                     # headroom for Mosaic scratch

    N128 = _round_up(N, 128)
    if tile_n is None:
        tile_n = 128
        for cand in (1024, 512, 256, 128):
            if cand <= N128 and N128 % cand == 0:
                dyn = 2 * C_pad * cand * x_bytes + 2 * cand * D_pad * o_bytes
                if resident + dyn <= budget:
                    tile_n = cand
                    break
    N_pad = _round_up(N, tile_n)
    if N_pad != N:
        x = jnp.pad(x, ((0, 0), (0, 0), (0, N_pad - N)))

    grid = (B, N_pad // tile_n)
    needed = resident + 2 * C_pad * tile_n * x_bytes + 2 * tile_n * D_pad * o_bytes
    vmem_limit = int(min(cap, max(32 * 1024 * 1024, needed + 4 * 1024 * 1024)))

    cost = pl.CostEstimate(
        flops=2 * B * N_pad * C_pad * D_pad,
        transcendentals=0,
        bytes_accessed=(B * C_pad * N_pad * x_bytes            # x slabs
                        + C_pad * D_pad * x_bytes               # weight (fetched once)
                        + B * N_pad * D_pad * o_bytes),         # output
    )

    def _build(single_buffer_weights):
        if single_buffer_weights:
            w_spec = pl.BlockSpec((C_pad, D_pad), lambda bi, ni: (0, 0),
                                  pipeline_mode=pl.Buffered(1))
            b_spec = pl.BlockSpec((1, D_pad), lambda bi, ni: (0, 0),
                                  pipeline_mode=pl.Buffered(1))
        else:
            w_spec = pl.BlockSpec((C_pad, D_pad), lambda bi, ni: (0, 0))
            b_spec = pl.BlockSpec((1, D_pad), lambda bi, ni: (0, 0))
        return pl.pallas_call(
            _hybrid_embed_kernel,
            out_shape=jax.ShapeDtypeStruct((B, N_pad, D_pad), out_dtype),
            grid_spec=pltpu.PrefetchScalarGridSpec(
                num_scalar_prefetch=0,
                grid=grid,
                in_specs=[
                    # Feature map: one batch element, channel-major patch slab.
                    pl.BlockSpec((None, C_pad, tile_n), lambda bi, ni: (bi, 0, ni)),
                    w_spec,   # weight: constant index_map -> VMEM-resident
                    b_spec,   # bias:   constant index_map -> VMEM-resident
                ],
                out_specs=pl.BlockSpec((None, tile_n, D_pad),
                                       lambda bi, ni: (bi, ni, 0)),
            ),
            compiler_params=pltpu.CompilerParams(
                dimension_semantics=("parallel", "parallel"),
                vmem_limit_bytes=vmem_limit),
            cost_estimate=cost,
        )(x, w, b)

    try:
        out = _build(True)            # single-buffered resident weight/bias
    except Exception:
        out = _build(False)           # fallback if Buffered(1) is unsupported
    return out[:, :N, :D]             # strip N / D padding


if __name__ == "__main__":
    # Small, deterministic shapes consistent with the module:
    #   backbone output feature map (B, feature_dim, Hf, Wf) -> (B, N, embed_dim)
    B, C, H, W = 2, 16, 16, 16        # feature_dim=16, 16x16 feature map (N=256)
    D = 32                            # embed_dim (padded to 128 inside the kernel)

    key = jax.random.PRNGKey(0)
    k1, k2, k3 = jax.random.split(key, 3)
    feat = jax.random.normal(k1, (B, C, H, W), jnp.float32)
    weight = jax.random.normal(k2, (D, C), jnp.float32) * 0.05   # torch Linear (out, in)
    bias = jax.random.normal(k3, (D,), jnp.float32) * 0.05

    out = hybrid_embed(feat, weight, bias)
    out = jax.block_until_ready(out)
    assert out.shape == (B, H * W, D), out.shape

    x_nc = feat.reshape(B, C, H * W).transpose(0, 2, 1)          # (B, N, C)

    # bf16-matched reference (same operand precision, f32 accumulation).
    ref_bf16 = jnp.einsum(
        "bnc,dc->bnd",
        x_nc.astype(jnp.bfloat16), weight.astype(jnp.bfloat16),
        preferred_element_type=jnp.float32) + bias
    err_bf16 = float(jnp.max(jnp.abs(out.astype(jnp.float32) - ref_bf16)))
    assert err_bf16 < 1e-2, f"mismatch vs bf16-matched reference: {err_bf16}"

    # Full-precision reference of the original forward (post-backbone).
    ref_f32 = x_nc @ weight.T + bias
    err_f32 = float(jnp.max(jnp.abs(out.astype(jnp.float32) - ref_f32)))
    assert err_f32 < 5e-2, f"mismatch vs f32 reference: {err_f32}"

    print("KERNEL_OK")
</pallas_src>

<mosaic_0001>
module attributes {stable_mosaic.version = 11 : i64} {
  func.func @_hybrid_embed_kernel(%arg0: i32, %arg1: i32, %arg2: memref<1x16x256xbf16, #tpu.memory_space<vmem>>, %arg3: memref<16x128xbf16, #tpu.memory_space<vmem>>, %arg4: memref<1x128xf32, #tpu.memory_space<vmem>>, %arg5: memref<1x256x128xf32, #tpu.memory_space<vmem>>) attributes {dimension_semantics = [#tpu.dimension_semantics<parallel>, #tpu.dimension_semantics<parallel>], iteration_bounds = array<i64: 2, 1>, scalar_prefetch = 0 : i64, scratch_operands = 0 : i64, tpu.core_type = #tpu.core_type<tc>, window_params = [{transform_indices = @transform_0, window_bounds = array<i64: 1, 16, 256>}, {pipeline_mode = #tpu.pipeline_mode<synchronous>, transform_indices = @transform_1, window_bounds = array<i64: 16, 128>}, {pipeline_mode = #tpu.pipeline_mode<synchronous>, transform_indices = @transform_2, window_bounds = array<i64: 1, 128>}, {transform_indices = @transform_3, window_bounds = array<i64: 1, 256, 128>}]} {
    %c0 = arith.constant 0 : index
    %c0_0 = arith.constant 0 : index
    %c0_1 = arith.constant 0 : index
    %0 = vector.load %arg2[%c0, %c0_0, %c0_1] : memref<1x16x256xbf16, #tpu.memory_space<vmem>>, vector<1x16x256xbf16>
    %1 = vector.shape_cast %0 : vector<1x16x256xbf16> to vector<16x256xbf16>
    %c0_2 = arith.constant 0 : index
    %c0_3 = arith.constant 0 : index
    %2 = vector.load %arg3[%c0_2, %c0_3] : memref<16x128xbf16, #tpu.memory_space<vmem>>, vector<16x128xbf16>
    %cst = arith.constant dense<0.000000e+00> : vector<256x128xf32>
    %3 = tpu.matmul %1, %2, %cst {dimension_numbers = #tpu.dot_dimension_numbers<[0], [0], [1], [1], [0, 1, 1, 1], [], []>} : vector<16x256xbf16>, vector<16x128xbf16>, vector<256x128xf32> -> vector<256x128xf32>
    %c0_4 = arith.constant 0 : index
    %c0_5 = arith.constant 0 : index
    %4 = vector.load %arg4[%c0_4, %c0_5] : memref<1x128xf32, #tpu.memory_space<vmem>>, vector<1x128xf32>
    %5 = vector.broadcast %4 : vector<1x128xf32> to vector<256x128xf32>
    %6 = arith.addf %3, %5 : vector<256x128xf32>
    %c0_6 = arith.constant 0 : index
    %c0_7 = arith.constant 0 : index
    %c0_8 = arith.constant 0 : index
    %7 = vector.load %arg5[%c0_6, %c0_7, %c0_8] : memref<1x256x128xf32, #tpu.memory_space<vmem>>, vector<1x256x128xf32>
    %8 = vector.shape_cast %7 : vector<1x256x128xf32> to vector<256x128xf32>
    %9 = vector.shape_cast %6 : vector<256x128xf32> to vector<1x256x128xf32>
    tpu.vector_store %arg5[%c0_6, %c0_7, %c0_8], %9 {strides = array<i32>} : memref<1x256x128xf32, #tpu.memory_space<vmem>>, vector<1x256x128xf32>,
    return
  }
  func.func @transform_0(%arg0: i32, %arg1: i32) -> (i32, i32, i32) {
    %c0_i32 = arith.constant 0 : i32
    %c0_i32_0 = arith.constant 0 : i32
    return %arg0, %c0_i32, %arg1 : i32, i32, i32
  }
  func.func @transform_1(%arg0: i32, %arg1: i32) -> (i32, i32) {
    %c0_i32 = arith.constant 0 : i32
    %c0_i32_0 = arith.constant 0 : i32
    %c0_i32_1 = arith.constant 0 : i32
    return %c0_i32, %c0_i32_0 : i32, i32
  }
  func.func @transform_2(%arg0: i32, %arg1: i32) -> (i32, i32) {
    %c0_i32 = arith.constant 0 : i32
    %c0_i32_0 = arith.constant 0 : i32
    %c0_i32_1 = arith.constant 0 : i32
    return %c0_i32, %c0_i32_0 : i32, i32
  }
  func.func @transform_3(%arg0: i32, %arg1: i32) -> (i32, i32, i32) {
    %c0_i32 = arith.constant 0 : i32
    %c0_i32_0 = arith.constant 0 : i32
    return %arg0, %arg1, %c0_i32 : i32, i32, i32
  }
}

module attributes {stable_mosaic.version = 11 : i64} {
  func.func @_hybrid_embed_kernel(%arg0: i32, %arg1: i32, %arg2: memref<1x16x256xbf16, #tpu.memory_space<vmem>>, %arg3: memref<16x128xbf16, #tpu.memory_space<vmem>>, %arg4: memref<1x128xf32, #tpu.memory_space<vmem>>, %arg5: memref<1x256x128xf32, #tpu.memory_space<vmem>>) attributes {dimension_semantics = [#tpu.dimension_semantics<parallel>, #tpu.dimension_semantics<parallel>], iteration_bounds = array<i64: 2, 1>, scalar_prefetch = 0 : i64, scratch_operands = 0 : i64, tpu.core_type = #tpu.core_type<tc>, window_params = [{transform_indices = @transform_0, window_bounds = array<i64: 1, 16, 256>}, {pipeline_mode = #tpu.pipeline_mode<synchronous>, transform_indices = @transform_1, window_bounds = array<i64: 16, 128>}, {pipeline_mode = #tpu.pipeline_mode<synchronous>, transform_indices = @transform_2, window_bounds = array<i64: 1, 128>}, {transform_indices = @transform_3, window_bounds = array<i64: 1, 256, 128>}]} {
    %c0 = arith.constant 0 : index
    %c0_0 = arith.constant 0 : index
    %c0_1 = arith.constant 0 : index
    %0 = vector.load %arg2[%c0, %c0_0, %c0_1] : memref<1x16x256xbf16, #tpu.memory_space<vmem>>, vector<1x16x256xbf16>
    %1 = vector.shape_cast %0 : vector<1x16x256xbf16> to vector<16x256xbf16>
    %c0_2 = arith.constant 0 : index
    %c0_3 = arith.constant 0 : index
    %2 = vector.load %arg3[%c0_2, %c0_3] : memref<16x128xbf16, #tpu.memory_space<vmem>>, vector<16x128xbf16>
    %cst = arith.constant dense<0.000000e+00> : vector<256x128xf32>
    %3 = tpu.matmul %1, %2, %cst {dimension_numbers = #tpu.dot_dimension_numbers<[0], [0], [1], [1], [0, 1, 1, 1], [], []>} : vector<16x256xbf16>, vector<16x128xbf16>, vector<256x128xf32> -> vector<256x128xf32>
    %c0_4 = arith.constant 0 : index
    %c0_5 = arith.constant 0 : index
    %4 = vector.load %arg4[%c0_4, %c0_5] : memref<1x128xf32, #tpu.memory_space<vmem>>, vector<1x128xf32>
    %5 = vector.broadcast %4 : vector<1x128xf32> to vector<256x128xf32>
    %6 = arith.addf %3, %5 : vector<256x128xf32>
    %c0_6 = arith.constant 0 : index
    %c0_7 = arith.constant 0 : index
    %c0_8 = arith.constant 0 : index
    %7 = vector.load %arg5[%c0_6, %c0_7, %c0_8] : memref<1x256x128xf32, #tpu.memory_space<vmem>>, vector<1x256x128xf32>
    %8 = vector.shape_cast %7 : vector<1x256x128xf32> to vector<256x128xf32>
    %9 = vector.shape_cast %6 : vector<256x128xf32> to vector<1x256x128xf32>
    tpu.vector_store %arg5[%c0_6, %c0_7, %c0_8], %9 {strides = array<i32>} : memref<1x256x128xf32, #tpu.memory_space<vmem>>, vector<1x256x128xf32>,
    return
  }
  func.func @transform_0(%arg0: i32, %arg1: i32) -> (i32, i32, i32) {
    %c0_i32 = arith.constant 0 : i32
    %c0_i32_0 = arith.constant 0 : i32
    return %arg0, %c0_i32, %arg1 : i32, i32, i32
  }
  func.func @transform_1(%arg0: i32, %arg1: i32) -> (i32, i32) {
    %c0_i32 = arith.constant 0 : i32
    %c0_i32_0 = arith.constant 0 : i32
    %c0_i32_1 = arith.constant 0 : i32
    return %c0_i32, %c0_i32_0 : i32, i32
  }
  func.func @transform_2(%arg0: i32, %arg1: i32) -> (i32, i32) {
    %c0_i32 = arith.constant 0 : i32
    %c0_i32_0 = arith.constant 0 : i32
    %c0_i32_1 = arith.constant 0 : i32
    return %c0_i32, %c0_i32_0 : i32, i32
  }
  func.func @transform_3(%arg0: i32, %arg1: i32) -> (i32, i32, i32) {
    %c0_i32 = arith.constant 0 : i32
    %c0_i32_0 = arith.constant 0 : i32
    return %arg0, %arg1, %c0_i32 : i32, i32, i32
  }
}

</mosaic_0001>

<bundles_post_ra>
// kernel: tpu_custom_call.1
= control target key start
LH: loop header
LB: loop body
LE: loop exit
PB: predicated region body
PF: predicated region fallthrough
CT: control target
= control target key end

     0   :  { %8 = vsyncpa [#allocation3], 0  ;;  %s1254_s0 = inlined_call_operand.hbm [shape: bf16[2,16,256], index: 0, kind: input, shape index: {}]   ;;  %s1255_s1 = inlined_call_operand.hbm [shape: bf16[16,128], index: 1, kind: input, shape index: {}]   ;;  %s1256_s2 = inlined_call_operand.vmem [shape: f32[1,128], index: 2, kind: input, shape index: {}]   ;;  %s1257_s3 = inlined_call_operand.hbm [shape: f32[2,256,128], index: 3, kind: output, shape index: {}]  }
   0x1   :  { %10 = vsyncpa [#allocation3 + $0x1], 0 }
   0x2   :  { %11 = vsyncpa [#allocation6], 0 }
   0x3   :  { %12 = vsyncpa [#allocation4], 0 }
   0x4   :  { %14 = vsyncpa [#allocation4 + $0x1], 0  ;;  %s984_s12 = smov 0   ;;  %s986_s13 = smov 0  }
   0x5   :  { %s988_s14 = smov 0   ;;  %s990_s15 = smov 0  }
   0x6   :  { %s992_s16 = smov 0   ;;  %s994_s17 = smov 0  }
   0x7 LB: > { %s639_s18 = sadd.s32 4294967295, %s953_s17   ;;  %s640_s19 = sadd.s32 4294967294, %s953_s17   ;;  %s953_s17 = sphi %s994_s17, %s20_s17   ;;  %s949_s16 = sphi %s992_s16, %s1275_s16   ;;  %s945_s15 = sphi %s990_s15, %s1274_s15   ;;  %s941_s14 = sphi %s988_s14, %s1273_s14   ;;  %s937_s13 = sphi %s986_s13, %s1272_s13   ;;  %s933_s12 = sphi %s984_s12, %s1271_s12  }
   0x8   : > { %p54_p0 = scmp.ne.s32.totalorder %s937_s13, %s933_s12  ;;  %p1018_p1 = scmp.eq.s32.totalorder %s639_s18, 0 }
   0x9   : > { %p1022_p2 = scmp.eq.s32.totalorder %s639_s18, 1  ;;  %p128_p3 = scmp.eq.s32.totalorder %s640_s19, 1 }
   0xa   : > { %p1028_p4 = por %p1018_p1, %p54_p0  ;;  %p641_p5 = scmp.ge.s32.totalorder %s953_s17, 1 }
   0xb   : > { %p1033_p6 = por %p128_p3, %p54_p0  ;;  %p135_p7 = scmp.lt.s32.totalorder %s953_s17, 3 }
   0xc   : > { %s1261_s22 = scalar_select %p1028_p4, 1, 0 }
   0xd   : > { %s1262_s23 = scalar_select %p1033_p6, 1, 0 }
   0xe   : > { %p1038_p8 = pnand %p641_p5, %p135_p7  ;;  %s955_s25 = smov [#allocation5]  }
   0xf   : > { %s147_s26 = sshll.u32 %s955_s25, 4  ;;  %s32_s28 = sadd.s32 1, %s949_s16  ;;  %s148_s26 = int_to_ptr.vmem [resolvable:$true] %s147_s26 }
  0x10   : > { %p739_p9 = pneg %p1038_p8  ;;  %s826_s29 = scalar_lea.vmem %s148_s26, 128 }
  0x11   : > { %p827_p13 = scmp.ne.s32.totalorder %s148_s26, %s826_s29  ;;  %p834_p5 = scmp.lt.s32.totalorder %s148_s26, %s148_s26 }
  0x12   : > { %p1047_p11 = pnand %p739_p9, %p1018_p1  ;;  %p835_p7 = scmp.lt.s32.totalorder %s826_s29, %s826_s29 }
  0x14   : > { %p817_p12 = pneg %p1047_p11  ;;  %p836_p6 = por %p835_p7, %p834_p5 }
  0x16   : > { %p829_p0 = pnand %p827_p13, %p817_p12 }
  0x18   : > { %p830_p3 = pneg %p829_p0 }
  0x1a   : > { %p837_p4 = pnand %p836_p6, %p830_p3 }
  0x1c   : > { %840 = shalt.err (!%p837_p4)
}
  0x1d   : > { %s956_s30 = smov 64   ;;  %s957_s4 = smov 4  }
  0x1e   : > { %742 = dma.hbm_to_vmem [thread:$0]  (!%p1047_p11), %s1255_s1, 128, %s148_s26, [#allocation6], %s956_s30, %s956_s30, %s957_s4  }
  0x1f   : > { %p34_p6 = scmp.ge.s32.totalorder %s32_s28, 2  ;;  %s41_s7 = sadd.s32 1, %s941_s14 }
  0x20   : > { %p48_p4 = scmp.ne.s32.totalorder %s941_s14, %s937_s13  ;;  %p49_p9 = scmp.eq.s32.totalorder %s953_s17, 0 }
  0x21   : > { %s1277_s28 = smov (%p34_p6, %s32_s28), 0  ;;  %p752_p0 = scmp.lt.s32.totalorder %s953_s17, 2 }
  0x22   : > { %p1065_p12 = por %p49_p9, %p48_p4  ;;  %p1071_p13 = por %p1022_p2, %p48_p4 }
  0x23   : > { %s36_s10 = ssub.s32 %s949_s16, %s1277_s28  ;;  %s164_s11 = sand.u32 1, %s941_s14  }
  0x24   : > { %p39_p11 = scmp.eq.s32.totalorder %s36_s10, 0  ;;  %s644_s18 = sshll.u32 %s164_s11, 4 }
  0x25   : > { %s676_s25 = sshll.u32 %s949_s16, 8  ;;  %s168_s30 = scalar_lea.vmem [#allocation2], %s644_s18 }
  0x26   : > { %s1080_s19 = scalar_select %p39_p11, %s941_s14, %s41_s7  }
  0x27   : > { %s176_s29 = scalar_lea.hbm %s1254_s0, %s676_s25  ;;  %s177_s4 = sshll.u32 %s168_s30, 4  ;;  %s178_s4 = int_to_ptr.vmem [resolvable:$true] %s177_s4 }
  0x28   : > { %p1088_p2 = pnand %p752_p0, %p1065_p12  ;;  %s165_s5 = scalar_lea.sflag [#allocation3], %s164_s11 }
  0x29   : > { %s854_s6 = scalar_lea.vmem %s178_s4, 256  ;;  %s958_s7 = smov [#allocation2]  }
  0x2a   : > { %p843_p3 = pneg %p1088_p2  ;;  %p855_p5 = scmp.ne.s32.totalorder %s178_s4, %s854_s6 }
  0x2b   : > { %s859_s10 = sshll.u32 %s958_s7, 4  ;;  %s860_s10 = int_to_ptr.vmem [resolvable:$false] %s859_s10 }
  0x2c   : > { %p857_p7 = pnand %p855_p5, %p843_p3  ;;  %s861_s25 = scalar_lea.vmem %s860_s10, 512 }
  0x2d   : > { %p862_p4 = scmp.lt.s32.totalorder %s178_s4, %s860_s10  ;;  %p863_p9 = scmp.lt.s32.totalorder %s861_s25, %s854_s6 }
  0x2e   : > { %p858_p6 = pneg %p857_p7 }
  0x2f   : > { %p864_p11 = por %p863_p9, %p862_p4 }
  0x31   : > { %p865_p10 = pnand %p864_p11, %p858_p6 }
  0x33   : > { %868 = shalt.err (!%p865_p10)
}
  0x34   : > { %s959_s8 = smov 128   ;;  %s960_s18 = smov 8  }
  0x35   : > { %746 = dma.hbm_to_vmem [thread:$0]  (!%p1088_p2), %s176_s29, 256, %s178_s4, %s165_s5, %s959_s8, %s959_s8, %s960_s18  }
  0x36   : > { %189 = sbr.rel (%p1038_p8) target bundleno = 437 (0x1b5), region = 32  ;;  %s1099_s11 = sand.u32 (!%p1038_p8), 1, %s937_s13  }
  0x37   : > { %s648_s26 = sshll.u32 (!%p1038_p8), %s1099_s11, 4  ;;  %s192_s27 = scalar_lea.sflag (!%p1038_p8), [#allocation3], %s1099_s11 }
  0x38   : > { %s195_s30 = scalar_lea.vmem (!%p1038_p8), [#allocation2], %s648_s26  ;;  %p1268_p12 = scmp.ne.s32.totalorder (!%p1038_p8), %s1261_s22, 0 }
  0x3b   : > { %920 = dma.done.wait (%p1268_p12), %s192_s27, 256  }
  0x3c   : > { %922 = vsyncadd (%p1268_p12), %s192_s27, 4294967040 }
  0x3d   : > { %924 = dma.done.wait (%p1018_p1), [#allocation6], 128  }
  0x3e   : > { %926 = vsyncadd (%p1018_p1), [#allocation6], 4294967168  ;;  %v811_v0 = vld [vmem:[%s195_s30] ss:$8 sps:$4 sm:$0xff]   ;;  %v813_v2 = vld [vmem:[%s195_s30 + $0x4] ss:$8 sps:$4 sm:$0xff]  }
  0x3f   : > { %246 = vxpose.xlu0.c.b16.start.end [1/1] (short) %v811_v0, 128  ;;  %v814_v1 = vld [vmem:[#allocation5] sm:$0xff]   ;;  %vm284_vm0 = vcmask 130048   ;;  %s650_s20 = sshll.u32 %s1099_s11, 8  ;;  %s677_s4 = sshll.u32 %s945_s15, 12 }
  0x40   : > { %695 = vmatprep.subr.bf16.mxu0 %v814_v1  ;;  %729 = vmatprep.subr.bf16.mxu1 %v814_v1  ;;  %v1131_v19 = vld [vmem:[%s1256_s2] ss:$0 sm:$0xff]  ;;  %s1134_s29 = scalar_lea.vmem [#allocation7], %s650_s20  ;;  %s1201_s7 = scalar_lea.hbm %s1257_s3, %s677_s4 }
  0x41   : > { %696 = vmatpush3.bf16.msra.mxu0 %v814_v1  ;;  %730 = vmatpush3.bf16.msra.mxu1 %v814_v1  ;;  %s542_s21 = sshll.u32 %s1134_s29, 4  ;;  %s527_s15 = scalar_lea.sflag [#allocation4], %s1099_s11  ;;  %s1203_s21 = int_to_ptr.vmem [resolvable:$true] %s542_s21 }
  0x42   : > { %s869_s10 = scalar_lea.vmem %s1203_s21, 4096  ;;  %s961_s25 = smov [#allocation7]  }
  0x43   : > { %p870_p1 = scmp.ne.s32.totalorder %s1203_s21, %s869_s10  ;;  %s873_s8 = sshll.u32 %s961_s25, 4  ;;  %s874_s8 = int_to_ptr.vmem [resolvable:$false] %s873_s8 }
  0x44   : > { %s875_s18 = scalar_lea.vmem %s874_s8, 8192  ;;  %p876_p0 = scmp.lt.s32.totalorder %s1203_s21, %s874_s8 }
  0x45   : > { %p871_p8 = pnand %p870_p1, %p1071_p13  ;;  %p877_p2 = scmp.lt.s32.totalorder %s875_s18, %s869_s10 }
  0x47   : > { %p872_p10 = pneg %p871_p8  ;;  %p878_p3 = por %p877_p2, %p876_p0 }
  0x49   : > { %p879_p5 = pnand %p878_p3, %p872_p10 }
  0x5c   : > { %262 = vxpose.xlu0.c.b16.start.end [1/1] (short) %v813_v2, 128 }
  0xa1   : > { %v254_v3 = vpop.trf.xlu0 }
  0xa2   : > { %697 = vmatprep.mubr.msk.bf16.mxu0 %vm284_vm0, %v254_v3 }
  0xa5   : > { %v255_v4 = vpop.trf.xlu0 }
  0xa6   : > { %698 = vmatmul.mubr.msk.bf16.vlgmr.msra.gmra.mxu0 %vm284_vm0, %v255_v4 }
  0xa9   : > { %v256_v5 = vpop.trf.xlu0 }
  0xaa   : > { %701 = vmatprep.mubr.msk.bf16.mxu0 %vm284_vm0, %v256_v5 }
  0xad   : > { %v257_v6 = vpop.trf.xlu0 }
  0xae   : > { %702 = vmatmul.mubr.msk.bf16.gmra.mxu0 %vm284_vm0, %v257_v6 }
  0xb1   : > { %v258_v7 = vpop.trf.xlu0 }
  0xb2   : > { %705 = vmatprep.mubr.msk.bf16.mxu0 %vm284_vm0, %v258_v7 }
  0xb5   : > { %v259_v8 = vpop.trf.xlu0 }
  0xb6   : > { %706 = vmatmul.mubr.msk.bf16.gmra.mxu0 %vm284_vm0, %v259_v8 }
  0xb9   : > { %v260_v9 = vpop.trf.xlu0 }
  0xba   : > { %709 = vmatprep.mubr.msk.bf16.mxu0 %vm284_vm0, %v260_v9 }
  0xbd   : > { %v261_v10 = vpop.trf.xlu0 }
  0xbe   : > { %710 = vmatmul.mubr.msk.bf16.gmra.mxu0 %vm284_vm0, %v261_v10 }
  0xc1   : > { %v270_v11 = vpop.trf.xlu0 }
  0xc2   : > { %713 = vmatprep.mubr.msk.bf16.mxu1 %vm284_vm0, %v270_v11 }
  0xc5   : > { %v271_v12 = vpop.trf.xlu0 }
  0xc6   : > { %714 = vmatmul.mubr.msk.bf16.vlgmr.msra.gmra.mxu1 %vm284_vm0, %v271_v12 }
  0xc9   : > { %v272_v13 = vpop.trf.xlu0 }
  0xca   : > { %717 = vmatprep.mubr.msk.bf16.mxu1 %vm284_vm0, %v272_v13 }
  0xcd   : > { %v273_v14 = vpop.trf.xlu0 }
  0xce   : > { %718 = vmatmul.mubr.msk.bf16.gmra.mxu1 %vm284_vm0, %v273_v14 }
  0xd1   : > { %v274_v15 = vpop.trf.xlu0 }
  0xd2   : > { %721 = vmatprep.mubr.msk.bf16.mxu1 %vm284_vm0, %v274_v15 }
  0xd5   : > { %v275_v16 = vpop.trf.xlu0 }
  0xd6   : > { %722 = vmatmul.mubr.msk.bf16.gmra.mxu1 %vm284_vm0, %v275_v16 }
  0xd9   : > { %v276_v17 = vpop.trf.xlu0 }
  0xda   : > { %725 = vmatprep.mubr.msk.bf16.mxu1 %vm284_vm0, %v276_v17 }
  0xdd   : > { %v277_v18 = vpop.trf.xlu0 }
  0xde   : > { %726 = vmatmul.mubr.msk.bf16.gmra.mxu1 %vm284_vm0, %v277_v18 }
 0x166   : > { %v699_v20 = vpop.f32.mrf.mxu0 }
 0x167   : > { %v376_v21 = vadd.f32 %v699_v20, %v1131_v19 }
 0x168   : > { %v367_v22 = vpop.f32.mrf.mxu0 }
 0x169   : > { %496 = vst [vmem:[%s1134_s29 + $0x10] sm:$0xff] %v376_v21  ;;  %v368_v23 = vadd.f32 %v1131_v19, %v367_v22 }
 0x16a   : > { %v700_v24 = vpop.f32.mrf.mxu0 }
 0x16b   : > { %494 = vst [vmem:[%s1134_s29] sm:$0xff] %v368_v23  ;;  %v379_v25 = vadd.f32 %v700_v24, %v1131_v19 }
 0x16c   : > { %v370_v26 = vpop.f32.mrf.mxu0 }
 0x16d   : > { %497 = vst [vmem:[%s1134_s29 + $0x18] sm:$0xff] %v379_v25  ;;  %v371_v27 = vadd.f32 %v1131_v19, %v370_v26 }
 0x16e   : > { %v703_v28 = vpop.f32.mrf.mxu0 }
 0x16f   : > { %495 = vst [vmem:[%s1134_s29 + $0x8] sm:$0xff] %v371_v27  ;;  %v392_v29 = vadd.f32 %v703_v28, %v1131_v19 }
 0x170   : > { %v383_v30 = vpop.f32.mrf.mxu0 }
 0x171   : > { %500 = vst [vmem:[%s1134_s29 + $0x30] sm:$0xff] %v392_v29  ;;  %v384_v31 = vadd.f32 %v1131_v19, %v383_v30 }
 0x172   : > { %v704_v32 = vpop.f32.mrf.mxu0 }
 0x173   : > { %498 = vst [vmem:[%s1134_s29 + $0x20] sm:$0xff] %v384_v31  ;;  %v395_v33 = vadd.f32 %v704_v32, %v1131_v19 }
 0x174   : > { %v386_v34 = vpop.f32.mrf.mxu0 }
 0x175   : > { %501 = vst [vmem:[%s1134_s29 + $0x38] sm:$0xff] %v395_v33  ;;  %v387_v35 = vadd.f32 %v1131_v19, %v386_v34 }
 0x176   : > { %v707_v36 = vpop.f32.mrf.mxu0 }
 0x177   : > { %499 = vst [vmem:[%s1134_s29 + $0x28] sm:$0xff] %v387_v35  ;;  %v408_v37 = vadd.f32 %v707_v36, %v1131_v19 }
 0x178   : > { %v399_v38 = vpop.f32.mrf.mxu0 }
 0x179   : > { %504 = vst [vmem:[%s1134_s29 + $0x50] sm:$0xff] %v408_v37  ;;  %v400_v39 = vadd.f32 %v1131_v19, %v399_v38 }
 0x17a   : > { %v708_v40 = vpop.f32.mrf.mxu0 }
 0x17b   : > { %502 = vst [vmem:[%s1134_s29 + $0x40] sm:$0xff] %v400_v39  ;;  %v411_v41 = vadd.f32 %v708_v40, %v1131_v19 }
 0x17c   : > { %v402_v42 = vpop.f32.mrf.mxu0 }
 0x17d   : > { %505 = vst [vmem:[%s1134_s29 + $0x58] sm:$0xff] %v411_v41  ;;  %v403_v43 = vadd.f32 %v1131_v19, %v402_v42 }
 0x17e   : > { %v711_v44 = vpop.f32.mrf.mxu0 }
 0x17f   : > { %503 = vst [vmem:[%s1134_s29 + $0x48] sm:$0xff] %v403_v43  ;;  %v424_v45 = vadd.f32 %v711_v44, %v1131_v19 }
 0x180   : > { %v415_v46 = vpop.f32.mrf.mxu0 }
 0x181   : > { %508 = vst [vmem:[%s1134_s29 + $0x70] sm:$0xff] %v424_v45  ;;  %v416_v47 = vadd.f32 %v1131_v19, %v415_v46 }
 0x182   : > { %v712_v48 = vpop.f32.mrf.mxu0 }
 0x183   : > { %506 = vst [vmem:[%s1134_s29 + $0x60] sm:$0xff] %v416_v47  ;;  %v427_v49 = vadd.f32 %v712_v48, %v1131_v19 }
 0x184   : > { %v418_v50 = vpop.f32.mrf.mxu0 }
 0x185   : > { %509 = vst [vmem:[%s1134_s29 + $0x78] sm:$0xff] %v427_v49  ;;  %v419_v51 = vadd.f32 %v1131_v19, %v418_v50 }
 0x186   : > { %v715_v52 = vpop.f32.mrf.mxu1 }
 0x187   : > { %507 = vst [vmem:[%s1134_s29 + $0x68] sm:$0xff] %v419_v51  ;;  %v440_v53 = vadd.f32 %v715_v52, %v1131_v19 }
 0x188   : > { %v431_v54 = vpop.f32.mrf.mxu1 }
 0x189   : > { %512 = vst [vmem:[%s1134_s29 + $0x90] sm:$0xff] %v440_v53  ;;  %v432_v55 = vadd.f32 %v1131_v19, %v431_v54 }
 0x18a   : > { %v716_v56 = vpop.f32.mrf.mxu1 }
 0x18b   : > { %510 = vst [vmem:[%s1134_s29 + $0x80] sm:$0xff] %v432_v55  ;;  %v443_v57 = vadd.f32 %v716_v56, %v1131_v19 }
 0x18c   : > { %v434_v58 = vpop.f32.mrf.mxu1 }
 0x18d   : > { %513 = vst [vmem:[%s1134_s29 + $0x98] sm:$0xff] %v443_v57  ;;  %v435_v59 = vadd.f32 %v1131_v19, %v434_v58 }
 0x18e   : > { %v719_v60 = vpop.f32.mrf.mxu1 }
 0x18f   : > { %511 = vst [vmem:[%s1134_s29 + $0x88] sm:$0xff] %v435_v59  ;;  %v456_v61 = vadd.f32 %v719_v60, %v1131_v19 }
 0x190   : > { %v447_v62 = vpop.f32.mrf.mxu1 }
 0x191   : > { %516 = vst [vmem:[%s1134_s29 + $0xb0] sm:$0xff] %v456_v61  ;;  %v448_v63 = vadd.f32 %v1131_v19, %v447_v62 }
 0x192   : > { %v720_v0 = vpop.f32.mrf.mxu1 }
 0x193   : > { %514 = vst [vmem:[%s1134_s29 + $0xa0] sm:$0xff] %v448_v63  ;;  %v459_v1 = vadd.f32 %v720_v0, %v1131_v19 }
 0x194   : > { %v450_v2 = vpop.f32.mrf.mxu1 }
 0x195   : > { %517 = vst [vmem:[%s1134_s29 + $0xb8] sm:$0xff] %v459_v1  ;;  %v451_v3 = vadd.f32 %v1131_v19, %v450_v2 }
 0x196   : > { %v723_v4 = vpop.f32.mrf.mxu1 }
 0x197   : > { %515 = vst [vmem:[%s1134_s29 + $0xa8] sm:$0xff] %v451_v3  ;;  %v472_v5 = vadd.f32 %v723_v4, %v1131_v19 }
 0x198   : > { %v463_v6 = vpop.f32.mrf.mxu1 }
 0x199   : > { %520 = vst [vmem:[%s1134_s29 + $0xd0] sm:$0xff] %v472_v5  ;;  %v464_v7 = vadd.f32 %v1131_v19, %v463_v6 }
 0x19a   : > { %v724_v8 = vpop.f32.mrf.mxu1 }
 0x19b   : > { %518 = vst [vmem:[%s1134_s29 + $0xc0] sm:$0xff] %v464_v7  ;;  %v475_v9 = vadd.f32 %v724_v8, %v1131_v19 }
 0x19c   : > { %v466_v10 = vpop.f32.mrf.mxu1 }
 0x19d   : > { %521 = vst [vmem:[%s1134_s29 + $0xd8] sm:$0xff] %v475_v9  ;;  %v467_v11 = vadd.f32 %v1131_v19, %v466_v10 }
 0x19e   : > { %v727_v12 = vpop.f32.mrf.mxu1 }
 0x19f   : > { %519 = vst [vmem:[%s1134_s29 + $0xc8] sm:$0xff] %v467_v11  ;;  %v488_v13 = vadd.f32 %v727_v12, %v1131_v19 }
 0x1a0   : > { %v479_v14 = vpop.f32.mrf.mxu1 }
 0x1a1   : > { %524 = vst [vmem:[%s1134_s29 + $0xf0] sm:$0xff] %v488_v13  ;;  %v480_v15 = vadd.f32 %v1131_v19, %v479_v14 }
 0x1a2   : > { %v728_v16 = vpop.f32.mrf.mxu1 }
 0x1a3   : > { %522 = vst [vmem:[%s1134_s29 + $0xe0] sm:$0xff] %v480_v15  ;;  %v491_v17 = vadd.f32 %v728_v16, %v1131_v19 }
 0x1a4   : > { %v482_v18 = vpop.f32.mrf.mxu1 }
 0x1a5   : > { %525 = vst [vmem:[%s1134_s29 + $0xf8] sm:$0xff] %v491_v17  ;;  %v483_v20 = vadd.f32 %v1131_v19, %v482_v18 }
 0x1a7   : > { %523 = vst [vmem:[%s1134_s29 + $0xe8] sm:$0xff] %v483_v20 }
 0x1a8   : > { %882 = shalt.err (!%p879_p5)
}
 0x1a9   : > { %s883_s26 = scalar_lea.hbm %s1201_s7, 4096  ;;  %s887_s20 = scalar_lea.hbm %s1257_s3, 8192 }
 0x1aa   : > { %p884_p7 = scmp.ne.s32.totalorder %s1201_s7, %s883_s26  ;;  %p888_p9 = scmp.lt.s32.totalorder %s1201_s7, %s1257_s3 }
 0x1ab   : > { %p889_p11 = scmp.lt.s32.totalorder %s887_s20, %s883_s26 }
 0x1ac   : > { %p885_p6 = pnand %p884_p7, %p1071_p13 }
 0x1ad   : > { %p890_p12 = por %p889_p11, %p888_p9 }
 0x1ae   : > { %p886_p4 = pneg %p885_p6 }
 0x1b0   : > { %p891_p1 = pnand %p890_p12, %p886_p4 }
 0x1b2   : > { %894 = shalt.err (!%p891_p1)
}
 0x1b3   : > { %s962_s29 = smov 128   ;;  %s963_s4 = smov 8  }
 0x1b4   : > { %737 = dma.vmem_to_hbm [thread:$0]  (%p1071_p13), %s1203_s21, 4096, %s1201_s7, %s527_s15, %s962_s29, %s962_s29, %s963_s4  }
 0x1b5 PF: > { %s557_s5 = sand.u32 1, %s933_s12   ;;  %p1269_p8 = scmp.ne.s32.totalorder %s1262_s23, 0 }
 0x1b6   : > { %p1270_p10 = scmp.ge.s32.totalorder %s953_s17, 2  ;;  %s558_s6 = scalar_lea.sflag [#allocation4], %s557_s5 }
 0x1b8   : > { %p748_p0 = pnand %p1270_p10, %p1269_p8 }
 0x1ba   : > { %p749_p2 = pneg %p748_p0 }
 0x1bc   : > { %928 = dma.done.wait (%p749_p2), %s558_s6, 4096  }
 0x1bd   : > { %930 = vsyncadd (%p749_p2), %s558_s6, 4294963200  ;;  %s20_s17 = sadd.s32 1, %s953_s17   ;;  %s1271_s12 = smov %s937_s13 }
 0x1be   : > { %p17_p3 = scmp.ge.s32.totalorder %s20_s17, 4   ;;  %s1272_s13 = smov %s941_s14 }
 0x1bf   : > { %s1273_s14 = smov %s1080_s19  ;;  %s1274_s15 = smov %s949_s16 }
 0x1c0   : > { %s1275_s16 = smov %s1277_s28  ;;  %19 = sbr.rel (!%p17_p3) target bundleno = 7 (0x7), region = 81 }
 0x1c5   :  { %563 = vsyncpa [#allocation3], 1 }
 0x1c6   :  { %565 = vsyncpa [#allocation3 + $0x1], 1 }
 0x1c7   :  { %566 = vsyncpa [#allocation6], 1 }
 0x1c8   :  { %567 = vsyncpa [#allocation4], 1 }
 0x1c9   :  { %569 = vsyncpa [#allocation4 + $0x1], 1 }

// kernel: tpu_custom_call.1
= control target key start
LH: loop header
LB: loop body
LE: loop exit
PB: predicated region body
PF: predicated region fallthrough
CT: control target
= control target key end

     0   :  { %8 = vsyncpa [#allocation3], 0  ;;  %s1254_s0 = inlined_call_operand.hbm [shape: bf16[2,16,256], index: 0, kind: input, shape index: {}]   ;;  %s1255_s1 = inlined_call_operand.hbm [shape: bf16[16,128], index: 1, kind: input, shape index: {}]   ;;  %s1256_s2 = inlined_call_operand.vmem [shape: f32[1,128], index: 2, kind: input, shape index: {}]   ;;  %s1257_s3 = inlined_call_operand.hbm [shape: f32[2,256,128], index: 3, kind: output, shape index: {}]  }
   0x1   :  { %10 = vsyncpa [#allocation3 + $0x1], 0 }
   0x2   :  { %11 = vsyncpa [#allocation6], 0 }
   0x3   :  { %12 = vsyncpa [#allocation4], 0 }
   0x4   :  { %14 = vsyncpa [#allocation4 + $0x1], 0  ;;  %s984_s12 = smov 0   ;;  %s986_s13 = smov 0  }
   0x5   :  { %s988_s14 = smov 0   ;;  %s990_s15 = smov 0  }
   0x6   :  { %s992_s16 = smov 0   ;;  %s994_s17 = smov 0  }
   0x7 LB: > { %s639_s18 = sadd.s32 4294967295, %s953_s17   ;;  %s640_s19 = sadd.s32 4294967294, %s953_s17   ;;  %s953_s17 = sphi %s994_s17, %s20_s17   ;;  %s949_s16 = sphi %s992_s16, %s1275_s16   ;;  %s945_s15 = sphi %s990_s15, %s1274_s15   ;;  %s941_s14 = sphi %s988_s14, %s1273_s14   ;;  %s937_s13 = sphi %s986_s13, %s1272_s13   ;;  %s933_s12 = sphi %s984_s12, %s1271_s12  }
   0x8   : > { %p54_p0 = scmp.ne.s32.totalorder %s937_s13, %s933_s12  ;;  %p1018_p1 = scmp.eq.s32.totalorder %s639_s18, 0 }
   0x9   : > { %p1022_p2 = scmp.eq.s32.totalorder %s639_s18, 1  ;;  %p128_p3 = scmp.eq.s32.totalorder %s640_s19, 1 }
   0xa   : > { %p1028_p4 = por %p1018_p1, %p54_p0  ;;  %p641_p5 = scmp.ge.s32.totalorder %s953_s17, 1 }
   0xb   : > { %p1033_p6 = por %p128_p3, %p54_p0  ;;  %p135_p7 = scmp.lt.s32.totalorder %s953_s17, 3 }
   0xc   : > { %s1261_s22 = scalar_select %p1028_p4, 1, 0 }
   0xd   : > { %s1262_s23 = scalar_select %p1033_p6, 1, 0 }
   0xe   : > { %p1038_p8 = pnand %p641_p5, %p135_p7  ;;  %s955_s25 = smov [#allocation5]  }
   0xf   : > { %s147_s26 = sshll.u32 %s955_s25, 4  ;;  %s32_s28 = sadd.s32 1, %s949_s16  ;;  %s148_s26 = int_to_ptr.vmem [resolvable:$true] %s147_s26 }
  0x10   : > { %p739_p9 = pneg %p1038_p8  ;;  %s826_s29 = scalar_lea.vmem %s148_s26, 128 }
  0x11   : > { %p827_p13 = scmp.ne.s32.totalorder %s148_s26, %s826_s29  ;;  %p834_p5 = scmp.lt.s32.totalorder %s148_s26, %s148_s26 }
  0x12   : > { %p1047_p11 = pnand %p739_p9, %p1018_p1  ;;  %p835_p7 = scmp.lt.s32.totalorder %s826_s29, %s826_s29 }
  0x14   : > { %p817_p12 = pneg %p1047_p11  ;;  %p836_p6 = por %p835_p7, %p834_p5 }
  0x16   : > { %p829_p0 = pnand %p827_p13, %p817_p12 }
  0x18   : > { %p830_p3 = pneg %p829_p0 }
  0x1a   : > { %p837_p4 = pnand %p836_p6, %p830_p3 }
  0x1c   : > { %840 = shalt.err (!%p837_p4)
}
  0x1d   : > { %s956_s30 = smov 64   ;;  %s957_s4 = smov 4  }
  0x1e   : > { %742 = dma.hbm_to_vmem [thread:$0]  (!%p1047_p11), %s1255_s1, 128, %s148_s26, [#allocation6], %s956_s30, %s956_s30, %s957_s4  }
  0x1f   : > { %p34_p6 = scmp.ge.s32.totalorder %s32_s28, 2  ;;  %s41_s7 = sadd.s32 1, %s941_s14 }
  0x20   : > { %p48_p4 = scmp.ne.s32.totalorder %s941_s14, %s937_s13  ;;  %p49_p9 = scmp.eq.s32.totalorder %s953_s17, 0 }
  0x21   : > { %s1277_s28 = smov (%p34_p6, %s32_s28), 0  ;;  %p752_p0 = scmp.lt.s32.totalorder %s953_s17, 2 }
  0x22   : > { %p1065_p12 = por %p49_p9, %p48_p4  ;;  %p1071_p13 = por %p1022_p2, %p48_p4 }
  0x23   : > { %s36_s10 = ssub.s32 %s949_s16, %s1277_s28  ;;  %s164_s11 = sand.u32 1, %s941_s14  }
  0x24   : > { %p39_p11 = scmp.eq.s32.totalorder %s36_s10, 0  ;;  %s644_s18 = sshll.u32 %s164_s11, 4 }
  0x25   : > { %s676_s25 = sshll.u32 %s949_s16, 8  ;;  %s168_s30 = scalar_lea.vmem [#allocation2], %s644_s18 }
  0x26   : > { %s1080_s19 = scalar_select %p39_p11, %s941_s14, %s41_s7  }
  0x27   : > { %s176_s29 = scalar_lea.hbm %s1254_s0, %s676_s25  ;;  %s177_s4 = sshll.u32 %s168_s30, 4  ;;  %s178_s4 = int_to_ptr.vmem [resolvable:$true] %s177_s4 }
  0x28   : > { %p1088_p2 = pnand %p752_p0, %p1065_p12  ;;  %s165_s5 = scalar_lea.sflag [#allocation3], %s164_s11 }
  0x29   : > { %s854_s6 = scalar_lea.vmem %s178_s4, 256  ;;  %s958_s7 = smov [#allocation2]  }
  0x2a   : > { %p843_p3 = pneg %p1088_p2  ;;  %p855_p5 = scmp.ne.s32.totalorder %s178_s4, %s854_s6 }
  0x2b   : > { %s859_s10 = sshll.u32 %s958_s7, 4  ;;  %s860_s10 = int_to_ptr.vmem [resolvable:$false] %s859_s10 }
  0x2c   : > { %p857_p7 = pnand %p855_p5, %p843_p3  ;;  %s861_s25 = scalar_lea.vmem %s860_s10, 512 }
  0x2d   : > { %p862_p4 = scmp.lt.s32.totalorder %s178_s4, %s860_s10  ;;  %p863_p9 = scmp.lt.s32.totalorder %s861_s25, %s854_s6 }
  0x2e   : > { %p858_p6 = pneg %p857_p7 }
  0x2f   : > { %p864_p11 = por %p863_p9, %p862_p4 }
  0x31   : > { %p865_p10 = pnand %p864_p11, %p858_p6 }
  0x33   : > { %868 = shalt.err (!%p865_p10)
}
  0x34   : > { %s959_s8 = smov 128   ;;  %s960_s18 = smov 8  }
  0x35   : > { %746 = dma.hbm_to_vmem [thread:$0]  (!%p1088_p2), %s176_s29, 256, %s178_s4, %s165_s5, %s959_s8, %s959_s8, %s960_s18  }
  0x36   : > { %189 = sbr.rel (%p1038_p8) target bundleno = 437 (0x1b5), region = 32  ;;  %s1099_s11 = sand.u32 (!%p1038_p8), 1, %s937_s13  }
  0x37   : > { %s648_s26 = sshll.u32 (!%p1038_p8), %s1099_s11, 4  ;;  %s192_s27 = scalar_lea.sflag (!%p1038_p8), [#allocation3], %s1099_s11 }
  0x38   : > { %s195_s30 = scalar_lea.vmem (!%p1038_p8), [#allocation2], %s648_s26  ;;  %p1268_p12 = scmp.ne.s32.totalorder (!%p1038_p8), %s1261_s22, 0 }
  0x3b   : > { %920 = dma.done.wait (%p1268_p12), %s192_s27, 256  }
  0x3c   : > { %922 = vsyncadd (%p1268_p12), %s192_s27, 4294967040 }
  0x3d   : > { %924 = dma.done.wait (%p1018_p1), [#allocation6], 128  }
  0x3e   : > { %926 = vsyncadd (%p1018_p1), [#allocation6], 4294967168  ;;  %v811_v0 = vld [vmem:[%s195_s30] ss:$8 sps:$4 sm:$0xff]   ;;  %v813_v2 = vld [vmem:[%s195_s30 + $0x4] ss:$8 sps:$4 sm:$0xff]  }
  0x3f   : > { %246 = vxpose.xlu0.c.b16.start.end [1/1] (short) %v811_v0, 128  ;;  %v814_v1 = vld [vmem:[#allocation5] sm:$0xff]   ;;  %vm284_vm0 = vcmask 130048   ;;  %s650_s20 = sshll.u32 %s1099_s11, 8  ;;  %s677_s4 = sshll.u32 %s945_s15, 12 }
  0x40   : > { %695 = vmatprep.subr.bf16.mxu0 %v814_v1  ;;  %729 = vmatprep.subr.bf16.mxu1 %v814_v1  ;;  %v1131_v19 = vld [vmem:[%s1256_s2] ss:$0 sm:$0xff]  ;;  %s1134_s29 = scalar_lea.vmem [#allocation7], %s650_s20  ;;  %s1201_s7 = scalar_lea.hbm %s1257_s3, %s677_s4 }
  0x41   : > { %696 = vmatpush3.bf16.msra.mxu0 %v814_v1  ;;  %730 = vmatpush3.bf16.msra.mxu1 %v814_v1  ;;  %s542_s21 = sshll.u32 %s1134_s29, 4  ;;  %s527_s15 = scalar_lea.sflag [#allocation4], %s1099_s11  ;;  %s1203_s21 = int_to_ptr.vmem [resolvable:$true] %s542_s21 }
  0x42   : > { %s869_s10 = scalar_lea.vmem %s1203_s21, 4096  ;;  %s961_s25 = smov [#allocation7]  }
  0x43   : > { %p870_p1 = scmp.ne.s32.totalorder %s1203_s21, %s869_s10  ;;  %s873_s8 = sshll.u32 %s961_s25, 4  ;;  %s874_s8 = int_to_ptr.vmem [resolvable:$false] %s873_s8 }
  0x44   : > { %s875_s18 = scalar_lea.vmem %s874_s8, 8192  ;;  %p876_p0 = scmp.lt.s32.totalorder %s1203_s21, %s874_s8 }
  0x45   : > { %p871_p8 = pnand %p870_p1, %p1071_p13  ;;  %p877_p2 = scmp.lt.s32.totalorder %s875_s18, %s869_s10 }
  0x47   : > { %p872_p10 = pneg %p871_p8  ;;  %p878_p3 = por %p877_p2, %p876_p0 }
  0x49   : > { %p879_p5 = pnand %p878_p3, %p872_p10 }
  0x5c   : > { %262 = vxpose.xlu0.c.b16.start.end [1/1] (short) %v813_v2, 128 }
  0xa1   : > { %v254_v3 = vpop.trf.xlu0 }
  0xa2   : > { %697 = vmatprep.mubr.msk.bf16.mxu0 %vm284_vm0, %v254_v3 }
  0xa5   : > { %v255_v4 = vpop.trf.xlu0 }
  0xa6   : > { %698 = vmatmul.mubr.msk.bf16.vlgmr.msra.gmra.mxu0 %vm284_vm0, %v255_v4 }
  0xa9   : > { %v256_v5 = vpop.trf.xlu0 }
  0xaa   : > { %701 = vmatprep.mubr.msk.bf16.mxu0 %vm284_vm0, %v256_v5 }
  0xad   : > { %v257_v6 = vpop.trf.xlu0 }
  0xae   : > { %702 = vmatmul.mubr.msk.bf16.gmra.mxu0 %vm284_vm0, %v257_v6 }
  0xb1   : > { %v258_v7 = vpop.trf.xlu0 }
  0xb2   : > { %705 = vmatprep.mubr.msk.bf16.mxu0 %vm284_vm0, %v258_v7 }
  0xb5   : > { %v259_v8 = vpop.trf.xlu0 }
  0xb6   : > { %706 = vmatmul.mubr.msk.bf16.gmra.mxu0 %vm284_vm0, %v259_v8 }
  0xb9   : > { %v260_v9 = vpop.trf.xlu0 }
  0xba   : > { %709 = vmatprep.mubr.msk.bf16.mxu0 %vm284_vm0, %v260_v9 }
  0xbd   : > { %v261_v10 = vpop.trf.xlu0 }
  0xbe   : > { %710 = vmatmul.mubr.msk.bf16.gmra.mxu0 %vm284_vm0, %v261_v10 }
  0xc1   : > { %v270_v11 = vpop.trf.xlu0 }
  0xc2   : > { %713 = vmatprep.mubr.msk.bf16.mxu1 %vm284_vm0, %v270_v11 }
  0xc5   : > { %v271_v12 = vpop.trf.xlu0 }
  0xc6   : > { %714 = vmatmul.mubr.msk.bf16.vlgmr.msra.gmra.mxu1 %vm284_vm0, %v271_v12 }
  0xc9   : > { %v272_v13 = vpop.trf.xlu0 }
  0xca   : > { %717 = vmatprep.mubr.msk.bf16.mxu1 %vm284_vm0, %v272_v13 }
  0xcd   : > { %v273_v14 = vpop.trf.xlu0 }
  0xce   : > { %718 = vmatmul.mubr.msk.bf16.gmra.mxu1 %vm284_vm0, %v273_v14 }
  0xd1   : > { %v274_v15 = vpop.trf.xlu0 }
  0xd2   : > { %721 = vmatprep.mubr.msk.bf16.mxu1 %vm284_vm0, %v274_v15 }
  0xd5   : > { %v275_v16 = vpop.trf.xlu0 }
  0xd6   : > { %722 = vmatmul.mubr.msk.bf16.gmra.mxu1 %vm284_vm0, %v275_v16 }
  0xd9   : > { %v276_v17 = vpop.trf.xlu0 }
  0xda   : > { %725 = vmatprep.mubr.msk.bf16.mxu1 %vm284_vm0, %v276_v17 }
  0xdd   : > { %v277_v18 = vpop.trf.xlu0 }
  0xde   : > { %726 = vmatmul.mubr.msk.bf16.gmra.mxu1 %vm284_vm0, %v277_v18 }
 0x166   : > { %v699_v20 = vpop.f32.mrf.mxu0 }
 0x167   : > { %v376_v21 = vadd.f32 %v699_v20, %v1131_v19 }
 0x168   : > { %v367_v22 = vpop.f32.mrf.mxu0 }
 0x169   : > { %496 = vst [vmem:[%s1134_s29 + $0x10] sm:$0xff] %v376_v21  ;;  %v368_v23 = vadd.f32 %v1131_v19, %v367_v22 }
 0x16a   : > { %v700_v24 = vpop.f32.mrf.mxu0 }
 0x16b   : > { %494 = vst [vmem:[%s1134_s29] sm:$0xff] %v368_v23  ;;  %v379_v25 = vadd.f32 %v700_v24, %v1131_v19 }
 0x16c   : > { %v370_v26 = vpop.f32.mrf.mxu0 }
 0x16d   : > { %497 = vst [vmem:[%s1134_s29 + $0x18] sm:$0xff] %v379_v25  ;;  %v371_v27 = vadd.f32 %v1131_v19, %v370_v26 }
 0x16e   : > { %v703_v28 = vpop.f32.mrf.mxu0 }
 0x16f   : > { %495 = vst [vmem:[%s1134_s29 + $0x8] sm:$0xff] %v371_v27  ;;  %v392_v29 = vadd.f32 %v703_v28, %v1131_v19 }
 0x170   : > { %v383_v30 = vpop.f32.mrf.mxu0 }
 0x171   : > { %500 = vst [vmem:[%s1134_s29 + $0x30] sm:$0xff] %v392_v29  ;;  %v384_v31 = vadd.f32 %v1131_v19, %v383_v30 }
 0x172   : > { %v704_v32 = vpop.f32.mrf.mxu0 }
 0x173   : > { %498 = vst [vmem:[%s1134_s29 + $0x20] sm:$0xff] %v384_v31  ;;  %v395_v33 = vadd.f32 %v704_v32, %v1131_v19 }
 0x174   : > { %v386_v34 = vpop.f32.mrf.mxu0 }
 0x175   : > { %501 = vst [vmem:[%s1134_s29 + $0x38] sm:$0xff] %v395_v33  ;;  %v387_v35 = vadd.f32 %v1131_v19, %v386_v34 }
 0x176   : > { %v707_v36 = vpop.f32.mrf.mxu0 }
 0x177   : > { %499 = vst [vmem:[%s1134_s29 + $0x28] sm:$0xff] %v387_v35  ;;  %v408_v37 = vadd.f32 %v707_v36, %v1131_v19 }
 0x178   : > { %v399_v38 = vpop.f32.mrf.mxu0 }
 0x179   : > { %504 = vst [vmem:[%s1134_s29 + $0x50] sm:$0xff] %v408_v37  ;;  %v400_v39 = vadd.f32 %v1131_v19, %v399_v38 }
 0x17a   : > { %v708_v40 = vpop.f32.mrf.mxu0 }
 0x17b   : > { %502 = vst [vmem:[%s1134_s29 + $0x40] sm:$0xff] %v400_v39  ;;  %v411_v41 = vadd.f32 %v708_v40, %v1131_v19 }
 0x17c   : > { %v402_v42 = vpop.f32.mrf.mxu0 }
 0x17d   : > { %505 = vst [vmem:[%s1134_s29 + $0x58] sm:$0xff] %v411_v41  ;;  %v403_v43 = vadd.f32 %v1131_v19, %v402_v42 }
 0x17e   : > { %v711_v44 = vpop.f32.mrf.mxu0 }
 0x17f   : > { %503 = vst [vmem:[%s1134_s29 + $0x48] sm:$0xff] %v403_v43  ;;  %v424_v45 = vadd.f32 %v711_v44, %v1131_v19 }
 0x180   : > { %v415_v46 = vpop.f32.mrf.mxu0 }
 0x181   : > { %508 = vst [vmem:[%s1134_s29 + $0x70] sm:$0xff] %v424_v45  ;;  %v416_v47 = vadd.f32 %v1131_v19, %v415_v46 }
 0x182   : > { %v712_v48 = vpop.f32.mrf.mxu0 }
 0x183   : > { %506 = vst [vmem:[%s1134_s29 + $0x60] sm:$0xff] %v416_v47  ;;  %v427_v49 = vadd.f32 %v712_v48, %v1131_v19 }
 0x184   : > { %v418_v50 = vpop.f32.mrf.mxu0 }
 0x185   : > { %509 = vst [vmem:[%s1134_s29 + $0x78] sm:$0xff] %v427_v49  ;;  %v419_v51 = vadd.f32 %v1131_v19, %v418_v50 }
 0x186   : > { %v715_v52 = vpop.f32.mrf.mxu1 }
 0x187   : > { %507 = vst [vmem:[%s1134_s29 + $0x68] sm:$0xff] %v419_v51  ;;  %v440_v53 = vadd.f32 %v715_v52, %v1131_v19 }
 0x188   : > { %v431_v54 = vpop.f32.mrf.mxu1 }
 0x189   : > { %512 = vst [vmem:[%s1134_s29 + $0x90] sm:$0xff] %v440_v53  ;;  %v432_v55 = vadd.f32 %v1131_v19, %v431_v54 }
 0x18a   : > { %v716_v56 = vpop.f32.mrf.mxu1 }
 0x18b   : > { %510 = vst [vmem:[%s1134_s29 + $0x80] sm:$0xff] %v432_v55  ;;  %v443_v57 = vadd.f32 %v716_v56, %v1131_v19 }
 0x18c   : > { %v434_v58 = vpop.f32.mrf.mxu1 }
 0x18d   : > { %513 = vst [vmem:[%s1134_s29 + $0x98] sm:$0xff] %v443_v57  ;;  %v435_v59 = vadd.f32 %v1131_v19, %v434_v58 }
 0x18e   : > { %v719_v60 = vpop.f32.mrf.mxu1 }
 0x18f   : > { %511 = vst [vmem:[%s1134_s29 + $0x88] sm:$0xff] %v435_v59  ;;  %v456_v61 = vadd.f32 %v719_v60, %v1131_v19 }
 0x190   : > { %v447_v62 = vpop.f32.mrf.mxu1 }
 0x191   : > { %516 = vst [vmem:[%s1134_s29 + $0xb0] sm:$0xff] %v456_v61  ;;  %v448_v63 = vadd.f32 %v1131_v19, %v447_v62 }
 0x192   : > { %v720_v0 = vpop.f32.mrf.mxu1 }
 0x193   : > { %514 = vst [vmem:[%s1134_s29 + $0xa0] sm:$0xff] %v448_v63  ;;  %v459_v1 = vadd.f32 %v720_v0, %v1131_v19 }
 0x194   : > { %v450_v2 = vpop.f32.mrf.mxu1 }
 0x195   : > { %517 = vst [vmem:[%s1134_s29 + $0xb8] sm:$0xff] %v459_v1  ;;  %v451_v3 = vadd.f32 %v1131_v19, %v450_v2 }
 0x196   : > { %v723_v4 = vpop.f32.mrf.mxu1 }
 0x197   : > { %515 = vst [vmem:[%s1134_s29 + $0xa8] sm:$0xff] %v451_v3  ;;  %v472_v5 = vadd.f32 %v723_v4, %v1131_v19 }
 0x198   : > { %v463_v6 = vpop.f32.mrf.mxu1 }
 0x199   : > { %520 = vst [vmem:[%s1134_s29 + $0xd0] sm:$0xff] %v472_v5  ;;  %v464_v7 = vadd.f32 %v1131_v19, %v463_v6 }
 0x19a   : > { %v724_v8 = vpop.f32.mrf.mxu1 }
 0x19b   : > { %518 = vst [vmem:[%s1134_s29 + $0xc0] sm:$0xff] %v464_v7  ;;  %v475_v9 = vadd.f32 %v724_v8, %v1131_v19 }
 0x19c   : > { %v466_v10 = vpop.f32.mrf.mxu1 }
 0x19d   : > { %521 = vst [vmem:[%s1134_s29 + $0xd8] sm:$0xff] %v475_v9  ;;  %v467_v11 = vadd.f32 %v1131_v19, %v466_v10 }
 0x19e   : > { %v727_v12 = vpop.f32.mrf.mxu1 }
 0x19f   : > { %519 = vst [vmem:[%s1134_s29 + $0xc8] sm:$0xff] %v467_v11  ;;  %v488_v13 = vadd.f32 %v727_v12, %v1131_v19 }
 0x1a0   : > { %v479_v14 = vpop.f32.mrf.mxu1 }
 0x1a1   : > { %524 = vst [vmem:[%s1134_s29 + $0xf0] sm:$0xff] %v488_v13  ;;  %v480_v15 = vadd.f32 %v1131_v19, %v479_v14 }
 0x1a2   : > { %v728_v16 = vpop.f32.mrf.mxu1 }
 0x1a3   : > { %522 = vst [vmem:[%s1134_s29 + $0xe0] sm:$0xff] %v480_v15  ;;  %v491_v17 = vadd.f32 %v728_v16, %v1131_v19 }
 0x1a4   : > { %v482_v18 = vpop.f32.mrf.mxu1 }
 0x1a5   : > { %525 = vst [vmem:[%s1134_s29 + $0xf8] sm:$0xff] %v491_v17  ;;  %v483_v20 = vadd.f32 %v1131_v19, %v482_v18 }
 0x1a7   : > { %523 = vst [vmem:[%s1134_s29 + $0xe8] sm:$0xff] %v483_v20 }
 0x1a8   : > { %882 = shalt.err (!%p879_p5)
}
 0x1a9   : > { %s883_s26 = scalar_lea.hbm %s1201_s7, 4096  ;;  %s887_s20 = scalar_lea.hbm %s1257_s3, 8192 }
 0x1aa   : > { %p884_p7 = scmp.ne.s32.totalorder %s1201_s7, %s883_s26  ;;  %p888_p9 = scmp.lt.s32.totalorder %s1201_s7, %s1257_s3 }
 0x1ab   : > { %p889_p11 = scmp.lt.s32.totalorder %s887_s20, %s883_s26 }
 0x1ac   : > { %p885_p6 = pnand %p884_p7, %p1071_p13 }
 0x1ad   : > { %p890_p12 = por %p889_p11, %p888_p9 }
 0x1ae   : > { %p886_p4 = pneg %p885_p6 }
 0x1b0   : > { %p891_p1 = pnand %p890_p12, %p886_p4 }
 0x1b2   : > { %894 = shalt.err (!%p891_p1)
}
 0x1b3   : > { %s962_s29 = smov 128   ;;  %s963_s4 = smov 8  }
 0x1b4   : > { %737 = dma.vmem_to_hbm [thread:$0]  (%p1071_p13), %s1203_s21, 4096, %s1201_s7, %s527_s15, %s962_s29, %s962_s29, %s963_s4  }
 0x1b5 PF: > { %s557_s5 = sand.u32 1, %s933_s12   ;;  %p1269_p8 = scmp.ne.s32.totalorder %s1262_s23, 0 }
 0x1b6   : > { %p1270_p10 = scmp.ge.s32.totalorder %s953_s17, 2  ;;  %s558_s6 = scalar_lea.sflag [#allocation4], %s557_s5 }
 0x1b8   : > { %p748_p0 = pnand %p1270_p10, %p1269_p8 }
 0x1ba   : > { %p749_p2 = pneg %p748_p0 }
 0x1bc   : > { %928 = dma.done.wait (%p749_p2), %s558_s6, 4096  }
 0x1bd   : > { %930 = vsyncadd (%p749_p2), %s558_s6, 4294963200  ;;  %s20_s17 = sadd.s32 1, %s953_s17   ;;  %s1271_s12 = smov %s937_s13 }
 0x1be   : > { %p17_p3 = scmp.ge.s32.totalorder %s20_s17, 4   ;;  %s1272_s13 = smov %s941_s14 }
 0x1bf   : > { %s1273_s14 = smov %s1080_s19  ;;  %s1274_s15 = smov %s949_s16 }
 0x1c0   : > { %s1275_s16 = smov %s1277_s28  ;;  %19 = sbr.rel (!%p17_p3) target bundleno = 7 (0x7), region = 81 }
 0x1c5   :  { %563 = vsyncpa [#allocation3], 1 }
 0x1c6   :  { %565 = vsyncpa [#allocation3 + $0x1], 1 }
 0x1c7   :  { %566 = vsyncpa [#allocation6], 1 }
 0x1c8   :  { %567 = vsyncpa [#allocation4], 1 }
 0x1c9   :  { %569 = vsyncpa [#allocation4 + $0x1], 1 }

</bundles_post_ra>
